<compile_context>
chip_gen: v5e
topology: v5e:2x2
jax: 0.10.0
libtpu: 0.0.40
codegen_flags: <defaults>
</compile_context>

<pallas_src>
import functools

import jax
import jax.numpy as jnp
from jax.experimental import pallas as pl
from jax.experimental.pallas import tpu as pltpu


# ----------------------------- Pallas kernels --------------------------------


def _power_iter_kernel(wmt_ref, u_ref, inv_sigma_ref, *, power_iter):
    """Estimates 1/sigma(W) with `power_iter` power-iteration steps.

    wmt_ref:       (Kd, Cout)  W^T, where W = w_bar.reshape(Cout, Kd)
    u_ref:         (1, Cout)   left singular-vector estimate
    inv_sigma_ref: (1, 1)      output: 1 / sigma
    """
    eps = 1e-12
    wmt = wmt_ref[...]
    u = u_ref[...]
    wv = None
    for _ in range(power_iter):
        # v = l2norm(W^T u)   -> column vector (Kd, 1); lane-reduce, no transpose.
        v = jnp.sum(wmt * u, axis=1, keepdims=True)
        v = v / (jnp.sqrt(jnp.sum(v * v)) + eps)
        # u = l2norm(W v)     -> row vector (1, Cout); sublane-reduce.
        wv = jnp.sum(wmt * v, axis=0, keepdims=True)
        u = wv / (jnp.sqrt(jnp.sum(wv * wv)) + eps)
    sigma = jnp.sum(u * wv)                              # scalar: u . (W v)
    inv_sigma_ref[...] = (1.0 / sigma) * jnp.ones((1, 1), dtype=jnp.float32)


def _sn_conv_kernel(x_ref, w_ref, b_ref, inv_sigma_ref, out_ref, *,
                    kh, kw, stride, dilation, h_out, w_out):
    """conv2d(x, W / sigma) + b for one image of the batch.

    x_ref:         (1, Hp, Wp, Cin)    zero-padded NHWC image tile
    w_ref:         (KH, KW, Cin, Cout) un-normalized weight (HWIO)
    b_ref:         (1, Cout)
    inv_sigma_ref: (1, 1)
    out_ref:       (H_out*W_out, Cout)
    """
    x = x_ref[0]                                         # (Hp, Wp, Cin)
    cin = x.shape[-1]
    cout = out_ref.shape[-1]
    m = h_out * w_out

    acc = jnp.zeros((m, cout), jnp.float32)
    # Conv as a sum of KH*KW shifted matmuls (patches built in VMEM, not HBM).
    for ki in range(kh):
        for kj in range(kw):
            hi = ki * dilation
            wi = kj * dilation
            xs = x[hi:hi + (h_out - 1) * stride + 1:stride,
                   wi:wi + (w_out - 1) * stride + 1:stride, :]   # (H_out, W_out, Cin)
            xs2 = xs.reshape(m, cin)                             # leading-dim merge (cheap)
            acc = acc + jnp.dot(xs2, w_ref[ki, kj],
                                preferred_element_type=jnp.float32)

    # conv(x, W/sigma) + b == conv(x, W) * (1/sigma) + b   (bias not normalized)
    out_ref[...] = acc * inv_sigma_ref[...] + b_ref[...]


# -------------------------------- Wrapper -------------------------------------


def spectral_norm_conv2d(x, w_bar, b, u, *, stride=1, padding=0, dilation=1,
                         power_iter=1):
    """SpectralNorm(Conv2d) forward. x: (N, Cin, H, W) -> (N, Cout, H_out, W_out)."""
    N, Cin, H, W = x.shape
    Cout, _, KH, KW = w_bar.shape
    Kd = Cin * KH * KW
    H_out = (H + 2 * padding - dilation * (KH - 1) - 1) // stride + 1
    W_out = (W + 2 * padding - dilation * (KW - 1) - 1) // stride + 1
    M_img = H_out * W_out

    # ---- Kernel 1: power iteration -> 1/sigma (tiny, single block) ----------
    wmt = w_bar.reshape(Cout, Kd).T                      # (Kd, Cout)
    u2 = u.reshape(1, Cout)
    vmem = pl.BlockSpec(memory_space=pltpu.MemorySpace.VMEM)
    inv_sigma = pl.pallas_call(
        functools.partial(_power_iter_kernel, power_iter=power_iter),
        out_shape=jax.ShapeDtypeStruct((1, 1), jnp.float32),
        in_specs=[vmem, vmem],
        out_specs=vmem,
    )(wmt, u2)

    # ---- Kernel 2: conv with normalized weight, gridded over the batch ------
    # NHWC + spatial zero padding done once in the wrapper (no HBM im2col).
    x_nhwc = jnp.transpose(x, (0, 2, 3, 1))
    xp = jnp.pad(x_nhwc, ((0, 0), (padding, padding), (padding, padding), (0, 0)))
    Hp, Wp = xp.shape[1], xp.shape[2]
    w_hwio = jnp.transpose(w_bar, (2, 3, 1, 0))          # (KH, KW, Cin, Cout)
    b2 = b.reshape(1, Cout)

    out2d = pl.pallas_call(
        functools.partial(_sn_conv_kernel, kh=KH, kw=KW, stride=stride,
                          dilation=dilation, h_out=H_out, w_out=W_out),
        out_shape=jax.ShapeDtypeStruct((N * M_img, Cout), jnp.float32),
        grid=(N,),
        in_specs=[
            pl.BlockSpec((1, Hp, Wp, Cin), lambda n: (n, 0, 0, 0)),
            pl.BlockSpec((KH, KW, Cin, Cout), lambda n: (0, 0, 0, 0)),
            pl.BlockSpec((1, Cout), lambda n: (0, 0)),
            pl.BlockSpec((1, 1), lambda n: (0, 0)),
        ],
        out_specs=pl.BlockSpec((M_img, Cout), lambda n: (n, 0)),
        compiler_params=pltpu.CompilerParams(dimension_semantics=("parallel",)),
    )(xp, w_hwio, b2, inv_sigma)

    # (N*H_out*W_out, Cout) -> NCHW to match the PyTorch module's layout.
    return out2d.reshape(N, H_out, W_out, Cout).transpose(0, 3, 1, 2)


# ------------------------------- Reference ------------------------------------


def spectral_norm_conv2d_reference(x, w_bar, b, u, *, stride=1, padding=0,
                                   dilation=1, power_iter=1):
    eps = 1e-12
    Cout = w_bar.shape[0]
    wm = w_bar.reshape(Cout, -1)
    u_ = u
    v_ = None
    for _ in range(power_iter):
        v_ = wm.T @ u_
        v_ = v_ / (jnp.linalg.norm(v_) + eps)
        u_ = wm @ v_
        u_ = u_ / (jnp.linalg.norm(u_) + eps)
    sigma = u_ @ (wm @ v_)
    w = w_bar / sigma

    dn = jax.lax.conv_dimension_numbers(x.shape, w.shape, ("NCHW", "OIHW", "NCHW"))
    y = jax.lax.conv_general_dilated(
        x, w, window_strides=(stride, stride),
        padding=[(padding, padding), (padding, padding)],
        rhs_dilation=(dilation, dilation), dimension_numbers=dn)
    return y + b[None, :, None, None]


# ---------------------------------- Main ---------------------------------------

if __name__ == "__main__":
    # Small shapes consistent with SpectralNorm(nn.Conv2d(4, 8, 3, padding=1)).
    N, Cin, H, W = 2, 4, 16, 16
    Cout, K, stride, padding, dilation = 8, 3, 1, 1, 1

    key = jax.random.PRNGKey(0)
    k_x, k_w, k_b, k_u = jax.random.split(key, 4)

    x = jax.random.normal(k_x, (N, Cin, H, W), dtype=jnp.float32)

    scale = 1.0 / (Cin * K * K) ** 0.5
    w_bar = jax.random.uniform(k_w, (Cout, Cin, K, K), minval=-scale, maxval=scale)
    b = jax.random.uniform(k_b, (Cout,), minval=-scale, maxval=scale)
    # u buffer as created by SpectralNorm._make_params (normal, then l2-normalized).
    u = jax.random.normal(k_u, (Cout,), dtype=jnp.float32)
    u = u / (jnp.linalg.norm(u) + 1e-12)

    out = spectral_norm_conv2d(x, w_bar, b, u, stride=stride, padding=padding,
                               dilation=dilation, power_iter=1)
    out = jax.block_until_ready(out)

    ref = spectral_norm_conv2d_reference(x, w_bar, b, u, stride=stride,
                                         padding=padding, dilation=dilation,
                                         power_iter=1)
    ref = jax.block_until_ready(ref)

    assert out.shape == (N, Cout, H, W), out.shape
    assert jnp.allclose(out, ref, atol=1e-5, rtol=1e-5), (
        float(jnp.max(jnp.abs(out - ref))))

    print("KERNEL_OK")
</pallas_src>

<mosaic_0001>
module attributes {stable_mosaic.version = 11 : i64} {
  func.func @_power_iter_kernel(%arg0: memref<36x8xf32, #tpu.memory_space<vmem>>, %arg1: memref<1x8xf32, #tpu.memory_space<vmem>>, %arg2: memref<1x1xf32, #tpu.memory_space<vmem>>) attributes {dimension_semantics = [], scalar_prefetch = 0 : i64, scratch_operands = 0 : i64, tpu.core_type = #tpu.core_type<tc>} {
    %c0 = arith.constant 0 : index
    %c0_0 = arith.constant 0 : index
    %0 = vector.load %arg0[%c0, %c0_0] : memref<36x8xf32, #tpu.memory_space<vmem>>, vector<36x8xf32>
    %c0_1 = arith.constant 0 : index
    %c0_2 = arith.constant 0 : index
    %1 = vector.load %arg1[%c0_1, %c0_2] : memref<1x8xf32, #tpu.memory_space<vmem>>, vector<1x8xf32>
    %2 = vector.broadcast %1 : vector<1x8xf32> to vector<36x8xf32>
    %3 = arith.mulf %0, %2 : vector<36x8xf32>
    %cst = arith.constant dense<0.000000e+00> : vector<36xf32>
    %4 = vector.multi_reduction <add>, %3, %cst [1] : vector<36x8xf32> to vector<36xf32>
    %5 = vector.shape_cast %4 : vector<36xf32> to vector<36x1xf32>
    %6 = arith.mulf %5, %5 : vector<36x1xf32>
    %7 = vector.shape_cast %6 : vector<36x1xf32> to vector<1x36x1xf32>
    %cst_3 = arith.constant dense<0.000000e+00> : vector<1xf32>
    %8 = vector.multi_reduction <add>, %7, %cst_3 [1, 2] : vector<1x36x1xf32> to vector<1xf32>
    %9 = vector.shape_cast %8 : vector<1xf32> to vector<1x1x1xf32>
    %10 = vector.extract %9[0, 0, 0] : f32 from vector<1x1x1xf32>
    %11 = math.sqrt %10 : f32
    %cst_4 = arith.constant 9.99999996E-13 : f32
    %12 = arith.addf %11, %cst_4 : f32
    %13 = vector.broadcast %12 : f32 to vector<36x1xf32>
    %14 = arith.divf %5, %13 : vector<36x1xf32>
    %15 = vector.broadcast %14 : vector<36x1xf32> to vector<36x8xf32>
    %16 = arith.mulf %0, %15 : vector<36x8xf32>
    %cst_5 = arith.constant dense<0.000000e+00> : vector<8xf32>
    %17 = vector.multi_reduction <add>, %16, %cst_5 [0] : vector<36x8xf32> to vector<8xf32>
    %18 = vector.shape_cast %17 : vector<8xf32> to vector<1x8xf32>
    %19 = arith.mulf %18, %18 : vector<1x8xf32>
    %20 = vector.shape_cast %19 : vector<1x8xf32> to vector<1x1x8xf32>
    %cst_6 = arith.constant dense<0.000000e+00> : vector<1xf32>
    %21 = vector.multi_reduction <add>, %20, %cst_6 [1, 2] : vector<1x1x8xf32> to vector<1xf32>
    %22 = vector.shape_cast %21 : vector<1xf32> to vector<1x1x1xf32>
    %23 = vector.extract %22[0, 0, 0] : f32 from vector<1x1x1xf32>
    %24 = math.sqrt %23 : f32
    %cst_7 = arith.constant 9.99999996E-13 : f32
    %25 = arith.addf %24, %cst_7 : f32
    %26 = vector.broadcast %25 : f32 to vector<1x8xf32>
    %27 = arith.divf %18, %26 : vector<1x8xf32>
    %28 = arith.mulf %27, %18 : vector<1x8xf32>
    %29 = vector.shape_cast %28 : vector<1x8xf32> to vector<1x1x8xf32>
    %cst_8 = arith.constant dense<0.000000e+00> : vector<1xf32>
    %30 = vector.multi_reduction <add>, %29, %cst_8 [1, 2] : vector<1x1x8xf32> to vector<1xf32>
    %31 = vector.shape_cast %30 : vector<1xf32> to vector<1x1x1xf32>
    %32 = vector.extract %31[0, 0, 0] : f32 from vector<1x1x1xf32>
    %cst_9 = arith.constant 1.000000e+00 : f32
    %33 = arith.divf %cst_9, %32 : f32
    %cst_10 = arith.constant 1.000000e+00 : f32
    %34 = vector.broadcast %cst_10 : f32 to vector<1x1xf32>
    %35 = vector.broadcast %33 : f32 to vector<1x1xf32>
    %36 = arith.mulf %35, %34 : vector<1x1xf32>
    %c0_11 = arith.constant 0 : index
    %c0_12 = arith.constant 0 : index
    %37 = vector.load %arg2[%c0_11, %c0_12] : memref<1x1xf32, #tpu.memory_space<vmem>>, vector<1x1xf32>
    tpu.vector_store %arg2[%c0_11, %c0_12], %36 {strides = array<i32>} : memref<1x1xf32, #tpu.memory_space<vmem>>, vector<1x1xf32>,
    return
  }
}

</mosaic_0001>

<bundles_post_ra>
// kernel: tpu_custom_call.1
= control target key start
LH: loop header
LB: loop body
LE: loop exit
PB: predicated region body
PF: predicated region fallthrough
CT: control target
= control target key end

     0   :  { %vm26_vm0 = vcmask 64512   ;;  %vm39_vm1 = vcmask 60416   ;;  %s346_s0 = inlined_call_operand.vmem [shape: f32[36,8], index: 0, kind: input, shape index: {}]   ;;  %s347_s1 = inlined_call_operand.vmem [shape: f32[1,8], index: 1, kind: input, shape index: {}]   ;;  %s348_s2 = inlined_call_operand.hbm [shape: f32[1,1], index: 2, kind: output, shape index: {}]  }
   0x1   :  { %v281_v0 = vld [vmem:[%s346_s0] sm:$0xff]  ;;  %v289_v2 = vld [vmem:[%s346_s0 + $0x10] sm:$0xff] }
   0x2   :  { %v225_v1 = vld [vmem:[%s347_s1] ss:$0 sm:$0xff] }
   0x3   :  { %v21_v3 = vmul.f32 %v225_v1, %v281_v0  ;;  %v23_v4 = vmul.f32 %v225_v1, %v289_v2  ;;  %v296_v5 = vld [vmem:[%s346_s0 + $0x20] sm:$0xf] }
   0x4   :  { %7 = vsyncpa [#allocation3], 0  ;;  %v301_v6 = vld [vmem:[%s346_s0 + $0x8] sm:$0xff]  ;;  %v306_v7 = vld [vmem:[%s346_s0 + $0x18] sm:$0xff]  ;;  %v25_v8 = vmul.f32 %v225_v1, %v296_v5  ;;  %vm48_vm2 = vcmask 7168   ;;  %vm56_vm3 = vcmask 3072  }
   0x5   :  { %v27_v9 = vsel %vm26_vm0, %v21_v3, 0.0  ;;  %v33_v10 = vsel %vm26_vm0, %v23_v4, 0.0  ;;  %v22_v12 = vmul.f32 %v225_v1, %v301_v6  ;;  %v24_v13 = vmul.f32 %v225_v1, %v306_v7  ;;  %s262_s26 = smov [#allocation2]   ;;  %s203_s30 = sshll.u32 %s348_s2, 4  ;;  %s204_s30 = int_to_ptr.hbm [resolvable:$true] %s203_s30 }
   0x6   :  { %28 = vadd.xlane.f32.xlu0 %v27_v9  ;;  %34 = vadd.xlane.f32.xlu1 %v33_v10  ;;  %v40_v11 = vsel %vm39_vm1, %v25_v8, 0.0  ;;  %vm124_vm10 = vcmask 57344   ;;  %s201_s27 = sshll.u32 %s262_s26, 4  ;;  %s202_s27 = int_to_ptr.vmem [resolvable:$true] %s201_s27 }
   0x7   :  { %41 = vadd.xlane.f32.xlu2 %v40_v11  ;;  %v30_v14 = vsel %vm26_vm0, %v22_v12, 0.0  ;;  %v36_v15 = vsel %vm26_vm0, %v24_v13, 0.0 }
   0xe   :  { %31 = vadd.xlane.f32.xlu0 %v30_v14  ;;  %37 = vadd.xlane.f32.xlu1 %v36_v15 }
  0x79   :  { %v316_v16 = vpop.xlane.xlu0 %28  ;;  %v318_v17 = vpop.xlane.xlu1 %34 }
  0x7a   :  { %v43_v18 = vmul.f32 %v316_v16, %v316_v16  ;;  %v322_v19 = vpop.xlane.xlu2 %41  ;;  %v45_v22 = vmul.f32 %v318_v17, %v318_v17 }
  0x7b   :  { %v47_v27 = vmul.f32 %v322_v19, %v322_v19 }
  0x7c   :  { %v49_v25 = vsel %vm48_vm2, %v43_v18, 0.0  ;;  %v52_v29 = vsel %vm48_vm2, %v45_v22, 0.0 }
  0x7d   :  { %v57_v32 = vsel %vm56_vm3, %v47_v27, 0.0 }
  0x81   :  { %v32_v20 = vpop.xlane.xlu0 %31  ;;  %v38_v21 = vpop.xlane.xlu1 %37 }
  0x82   :  { %v44_v23 = vmul.f32 %v32_v20, %v32_v20  ;;  %v46_v24 = vmul.f32 %v38_v21, %v38_v21 }
  0x84   :  { %v50_v26 = vsel %vm48_vm2, %v44_v23, 0.0  ;;  %v54_v30 = vsel %vm48_vm2, %v46_v24, 0.0 }
  0x85   :  { %v51_v28 = vadd.f32 %v50_v26, %v49_v25 }
  0x87   :  { %v53_v31 = vadd.f32 %v52_v29, %v51_v28 }
  0x89   :  { %v55_v33 = vadd.f32 %v54_v30, %v53_v31 }
  0x8b   :  { %v58_v34 = vadd.f32 %v57_v32, %v55_v33 }
  0x8d   :  { %59 = vadd.xlane.f32.xlu2 %v58_v34 }
 0x100   :  { %v60_v35 = vpop.xlane.xlu2 %59 }
 0x101   :  { %v61_v36 = vrot.slane %v60_v35, 4 }
 0x103   :  { %v62_v37 = vadd.f32 %v61_v36, %v60_v35 }
 0x105   :  { %v63_v38 = vrot.slane %v62_v37, 2 }
 0x107   :  { %v64_v39 = vadd.f32 %v63_v38, %v62_v37 }
 0x109   :  { %v65_v40 = vrot.slane %v64_v39, 1 }
 0x10b   :  { %v66_v41 = vadd.f32 %v65_v40, %v64_v39 }
 0x10d   :  { %212 = vpush %v66_v41 }
 0x13e   :  { %s213_s0 = spop %212 }
 0x13f   :  { %v68_v42 = vstv %s213_s0 }
 0x140   :  { %226 = vrsqrt.f32 %v68_v42  ;;  %vm76_vm4 = vcmp.eq.f32.partialorder %v68_v42, inf  ;;  %v79_v50 = vand.u32 2147483648, %v68_v42  ;;  %vm78_vm5 = vcmp.eq.f32.partialorder %v68_v42, 0.0 }
 0x146   :  { %v227_v43 = vpop.eup %226 }
 0x147   :  { %v70_v44 = vmul.f32 %v227_v43, %v68_v42 }
 0x149   :  { %v71_v45 = vmul.f32 %v227_v43, %v70_v44 }
 0x14b   :  { %v72_v46 = vmul.f32 0.5, %v71_v45 }
 0x14d   :  { %v73_v47 = vsub.f32 1.5, %v72_v46 }
 0x14f   :  { %v74_v48 = vmul.f32 %v227_v43, %v73_v47 }
 0x151   :  { %v75_v49 = vmul.f32 %v74_v48, %v68_v42 }
 0x153   :  { %v77_v51 = vsel %vm76_vm4, %v68_v42, %v75_v49 }
 0x154   :  { %v80_v52 = vsel %vm78_vm5, %v79_v50, %v77_v51  ;;  %vm194_vm5 = vcmask 0  }
 0x155   :  { %214 = vpush %v80_v52 }
 0x186   :  { %s215_s20 = spop %214 }
 0x187   :  { %s82_s21 = sadd.f32 1e-12, %s215_s20 }
 0x189   :  { %v83_v53 = vstv %s82_s21 }
 0x18a   :  { %228 = vrcp.f32 %v83_v53  ;;  %v95_v57 = vand.u32 2147483648, %v83_v53  ;;  %v93_v59 = vand.u32 2147483647, %v83_v53  ;;  %vm89_vm7 = vweird.f32 %v83_v53 }
 0x18c   :  { %v96_v61 = vor.u32 1.1754944e-38, %v95_v57  ;;  %vm94_vm9 = vcmp.eq.f32.partialorder %v93_v59, 8.507059e+37 }
 0x190   :  { %v229_v54 = vpop.eup %228 }
 0x191   :  { %v85_v55 = vmul.f32 %v229_v54, %v83_v53  ;;  %vm90_vm6 = vweird.f32 %v229_v54 }
 0x192   :  { %vm91_vm8 = vmor %vm89_vm7, %vm90_vm6 }
 0x193   :  { %v86_v56 = vsub.f32 1.0, %v85_v55 }
 0x195   :  { %v87_v58 = vmul.f32 %v229_v54, %v86_v56 }
 0x197   :  { %v88_v60 = vadd.f32 %v229_v54, %v87_v58 }
 0x199   :  { %v92_v62 = vsel %vm91_vm8, %v229_v54, %v88_v60 }
 0x19a   :  { %v97_v63 = vsel %vm94_vm9, %v96_v61, %v92_v62 }
 0x19b   :  { %v98_v1 = vmul.f32 %v97_v63, %v316_v16  ;;  %v99_v3 = vmul.f32 %v97_v63, %v32_v20  ;;  %v100_v4 = vmul.f32 %v97_v63, %v318_v17  ;;  %v101_v8 = vmul.f32 %v97_v63, %v38_v21 }
 0x19c   :  { %v102_v9 = vmul.f32 %v97_v63, %v322_v19 }
 0x19d   :  { %v103_v10 = vmul.f32 %v98_v1, %v281_v0  ;;  %v104_v11 = vmul.f32 %v99_v3, %v301_v6  ;;  %v105_v12 = vmul.f32 %v100_v4, %v289_v2  ;;  %v106_v13 = vmul.f32 %v101_v8, %v306_v7 }
 0x19e   :  { %v107_v16 = vmul.f32 %v102_v9, %v296_v5 }
 0x19f   :  { %v108_v14 = vsel %vm26_vm0, %v103_v10, 0.0  ;;  %v109_v15 = vsel %vm26_vm0, %v104_v11, 0.0  ;;  %v111_v17 = vsel %vm26_vm0, %v105_v12, 0.0  ;;  %v113_v19 = vsel %vm26_vm0, %v106_v13, 0.0 }
 0x1a0   :  { %v110_v18 = vadd.f32 %v109_v15, %v108_v14  ;;  %v115_v0 = vsel %vm39_vm1, %v107_v16, 0.0 }
 0x1a2   :  { %v112_v20 = vadd.f32 %v111_v17, %v110_v18 }
 0x1a4   :  { %v114_v21 = vadd.f32 %v113_v19, %v112_v20 }
 0x1a6   :  { %v116_v6 = vadd.f32 %v115_v0, %v114_v21 }
 0x1a8   :  { %v117_v22 = vrot.slane %v116_v6, 4 }
 0x1aa   :  { %v118_v2 = vadd.f32 %v117_v22, %v116_v6 }
 0x1ac   :  { %v119_v23 = vrot.slane %v118_v2, 2 }
 0x1ae   :  { %v120_v7 = vadd.f32 %v119_v23, %v118_v2 }
 0x1b0   :  { %v121_v24 = vrot.slane %v120_v7, 1 }
 0x1b2   :  { %v122_v25 = vadd.f32 %v121_v24, %v120_v7 }
 0x1b4   :  { %v123_v26 = vmul.f32 %v122_v25, %v122_v25 }
 0x1b6   :  { %v125_v27 = vsel %vm124_vm10, %v123_v26, 0.0 }
 0x1b7   :  { %126 = vadd.xlane.f32.xlu0 %v125_v27 }
 0x22a   :  { %v127_v5 = vpop.xlane.xlu0 %126 }
 0x22b   :  { %v128_v28 = vrot.slane %v127_v5, 4 }
 0x22d   :  { %v129_v29 = vadd.f32 %v128_v28, %v127_v5 }
 0x22f   :  { %v130_v30 = vrot.slane %v129_v29, 2 }
 0x231   :  { %v131_v31 = vadd.f32 %v130_v30, %v129_v29 }
 0x233   :  { %v132_v32 = vrot.slane %v131_v31, 1 }
 0x235   :  { %v133_v33 = vadd.f32 %v132_v32, %v131_v31 }
 0x237   :  { %216 = vpush %v133_v33 }
 0x268   :  { %s217_s22 = spop %216 }
 0x269   :  { %v135_v34 = vstv %s217_s22 }
 0x26a   :  { %230 = vrsqrt.f32 %v135_v34  ;;  %vm143_vm11 = vcmp.eq.f32.partialorder %v135_v34, inf  ;;  %v146_v42 = vand.u32 2147483648, %v135_v34  ;;  %vm145_vm12 = vcmp.eq.f32.partialorder %v135_v34, 0.0 }
 0x270   :  { %v231_v35 = vpop.eup %230 }
 0x271   :  { %v137_v36 = vmul.f32 %v231_v35, %v135_v34 }
 0x273   :  { %v138_v37 = vmul.f32 %v231_v35, %v137_v36 }
 0x275   :  { %v139_v38 = vmul.f32 0.5, %v138_v37 }
 0x277   :  { %v140_v39 = vsub.f32 1.5, %v139_v38 }
 0x279   :  { %v141_v40 = vmul.f32 %v231_v35, %v140_v39 }
 0x27b   :  { %v142_v41 = vmul.f32 %v141_v40, %v135_v34 }
 0x27d   :  { %v144_v43 = vsel %vm143_vm11, %v135_v34, %v142_v41 }
 0x27e   :  { %v147_v44 = vsel %vm145_vm12, %v146_v42, %v144_v43 }
 0x27f   :  { %218 = vpush %v147_v44 }
 0x2b0   :  { %s219_s23 = spop %218 }
 0x2b1   :  { %s149_s24 = sadd.f32 1e-12, %s219_s23 }
 0x2b3   :  { %v150_v45 = vstv %s149_s24 }
 0x2b4   :  { %232 = vrcp.f32 %v150_v45  ;;  %v162_v49 = vand.u32 2147483648, %v150_v45  ;;  %v160_v51 = vand.u32 2147483647, %v150_v45  ;;  %vm156_vm14 = vweird.f32 %v150_v45 }
 0x2b6   :  { %v163_v53 = vor.u32 1.1754944e-38, %v162_v49  ;;  %vm161_vm0 = vcmp.eq.f32.partialorder %v160_v51, 8.507059e+37 }
 0x2ba   :  { %v233_v46 = vpop.eup %232 }
 0x2bb   :  { %v152_v47 = vmul.f32 %v233_v46, %v150_v45  ;;  %vm157_vm13 = vweird.f32 %v233_v46 }
 0x2bc   :  { %vm158_vm15 = vmor %vm156_vm14, %vm157_vm13 }
 0x2bd   :  { %v153_v48 = vsub.f32 1.0, %v152_v47 }
 0x2bf   :  { %v154_v50 = vmul.f32 %v233_v46, %v153_v48 }
 0x2c1   :  { %v155_v52 = vadd.f32 %v233_v46, %v154_v50 }
 0x2c3   :  { %v159_v54 = vsel %vm158_vm15, %v233_v46, %v155_v52 }
 0x2c4   :  { %v164_v55 = vsel %vm161_vm0, %v163_v53, %v159_v54 }
 0x2c5   :  { %v165_v56 = vmul.f32 %v164_v55, %v122_v25 }
 0x2c7   :  { %v166_v57 = vmul.f32 %v165_v56, %v122_v25 }
 0x2c9   :  { %v167_v58 = vsel %vm124_vm10, %v166_v57, 0.0 }
 0x2ca   :  { %168 = vadd.xlane.f32.xlu1 %v167_v58 }
 0x33d   :  { %v169_v59 = vpop.xlane.xlu1 %168 }
 0x33e   :  { %v170_v60 = vrot.slane %v169_v59, 4 }
 0x340   :  { %v171_v61 = vadd.f32 %v170_v60, %v169_v59 }
 0x342   :  { %v172_v62 = vrot.slane %v171_v61, 2 }
 0x344   :  { %v173_v63 = vadd.f32 %v172_v62, %v171_v61 }
 0x346   :  { %v174_v1 = vrot.slane %v173_v63, 1 }
 0x348   :  { %v175_v3 = vadd.f32 %v174_v1, %v173_v63 }
 0x34a   :  { %220 = vpush %v175_v3 }
 0x37b   :  { %s221_s25 = spop %220 }
 0x37c   :  { %v177_v4 = vstv %s221_s25 }
 0x37d   :  { %234 = vrcp.f32 %v177_v4  ;;  %v189_v11 = vand.u32 2147483648, %v177_v4  ;;  %v187_v13 = vand.u32 2147483647, %v177_v4  ;;  %vm183_vm2 = vweird.f32 %v177_v4 }
 0x37f   :  { %v190_v15 = vor.u32 1.1754944e-38, %v189_v11  ;;  %vm188_vm4 = vcmp.eq.f32.partialorder %v187_v13, 8.507059e+37 }
 0x383   :  { %v235_v8 = vpop.eup %234 }
 0x384   :  { %v179_v9 = vmul.f32 %v235_v8, %v177_v4  ;;  %vm184_vm1 = vweird.f32 %v235_v8 }
 0x385   :  { %vm185_vm3 = vmor %vm183_vm2, %vm184_vm1 }
 0x386   :  { %v180_v10 = vsub.f32 1.0, %v179_v9 }
 0x388   :  { %v181_v12 = vmul.f32 %v235_v8, %v180_v10 }
 0x38a   :  { %v182_v14 = vadd.f32 %v235_v8, %v181_v12 }
 0x38c   :  { %v186_v18 = vsel %vm185_vm3, %v235_v8, %v182_v14 }
 0x38d   :  { %v191_v16 = vsel %vm188_vm4, %v190_v15, %v186_v18 }
 0x38e   :  { %222 = vpush %v191_v16 }
 0x3bf   :  { %s223_s3 = spop %222 }
 0x3c0   :  { %v193_v17 = vstv %s223_s3 }
 0x3c1   :  { %195 = vst.msk [vmem:[#allocation2] sm:$0x1] %vm194_vm5, %v193_v17 }
 0x3c2   :  { %206 = dma.vmem_to_hbm [thread:$0]  %s202_s27, 16, %s204_s30, [#allocation3]  }
 0x3c3   :  { %260 = dma.done.wait [#allocation3], 16  }
 0x3c4   :  { %261 = vsyncadd [#allocation3], 4294967280 }
 0x3c5   :  { %211 = vsyncpa [#allocation3], 1 }

</bundles_post_ra>
